<compile_context>
chip_gen: v5e
topology: v5e:2x2
jax: 0.10.0
libtpu: 0.0.40
codegen_flags: <defaults>
</compile_context>

<pallas_src>
import jax
import jax.numpy as jnp
import numpy as np
from jax.experimental import pallas as pl
from jax.experimental.pallas import tpu as pltpu


def _round_up(x, m):
    return (x + m - 1) // m * m


# ----------------------------------------------------------------------------
# Kernel 1: GRU cell (single layer, single time step), single grid step.
# Embedding lookup = manual row-gather DMAs overlapped with the h @ w_hh matmul.
# ----------------------------------------------------------------------------
def gru_cell_kernel(idx_ref, h_ref, w_ih_hbm, w_hh_ref, b_ih_ref, b_hh_ref,
                    h_out_ref, gi_scratch, sems):
    B_pad, H = h_ref.shape

    # One-hot @ w_ih == row gather of w_ih.  B_pad is a small static int, so a
    # static Python loop (fully unrolled at trace time) is fine here.
    def row_copy(b):
        row = idx_ref[b]
        return pltpu.make_async_copy(
            w_ih_hbm.at[pl.ds(row, 1), :],
            gi_scratch.at[pl.ds(b, 1), :],
            sems.at[b])

    for b in range(B_pad):           # issue all gathers
        row_copy(b).start()

    # Overlap: recurrent matmul while the gathers are in flight.
    gh = jnp.dot(h_ref[...], w_hh_ref[...],
                 preferred_element_type=jnp.float32) + b_hh_ref[...]

    for b in range(B_pad):           # wait for all gathers
        row_copy(b).wait()

    # TODO(synk): embedding_dropout / dropout_hidden are training-only
    # (self.training gate, num_layers==1); the eval path skips them.
    gi = gi_scratch[...] + b_ih_ref[...]
    h_prev = h_ref[...]

    i_r, i_z, i_n = gi[:, 0:H], gi[:, H:2 * H], gi[:, 2 * H:3 * H]
    h_r, h_z, h_n = gh[:, 0:H], gh[:, H:2 * H], gh[:, 2 * H:3 * H]

    r = jax.nn.sigmoid(i_r + h_r)
    z = jax.nn.sigmoid(i_z + h_z)
    n = jnp.tanh(i_n + r * h_n)
    h_out_ref[...] = (1.0 - z) * n + z * h_prev


# ----------------------------------------------------------------------------
# Kernel 2: h2o projection + tanh, tiled over the output (item) dimension.
# Supports bf16 weights (h is cast to the weight dtype; f32 MXU accumulation).
# ----------------------------------------------------------------------------
def h2o_kernel(h_ref, w_ho_ref, b_ho_ref, logit_ref):
    h = h_ref[...]
    w = w_ho_ref[...]
    if h.dtype != w.dtype:
        h = h.astype(w.dtype)
    acc = jnp.dot(h, w, preferred_element_type=jnp.float32)
    logit_ref[...] = jnp.tanh(acc + b_ho_ref[...])


def gru4rec_forward(idx, hidden, params, *, tn=8192):
    """idx: (B,) int32 item ids; hidden: (1, B, H) f32.  Returns (logit, hidden')."""
    B = idx.shape[0]
    IN, threeH = params["w_ih_t"].shape
    H = params["w_hh_t"].shape[0]
    OUT = params["w_ho_t"].shape[1]

    # Pad batch to a multiple of 8 (sublane tile); clamp ids so the row-gather
    # DMAs can never read out of range.
    B_pad = _round_up(B, 8)
    h0 = hidden[0]
    idx_i32 = idx.astype(jnp.int32)
    if B_pad != B:
        h0 = jnp.pad(h0, ((0, B_pad - B), (0, 0)))
        idx_i32 = jnp.pad(idx_i32, (0, B_pad - B))
    idx_i32 = jnp.clip(idx_i32, 0, IN - 1)

    # ---------------- GRU cell: one invocation, one grid step ----------------
    h_new = pl.pallas_call(
        gru_cell_kernel,
        out_shape=jax.ShapeDtypeStruct((B_pad, H), jnp.float32),
        grid_spec=pltpu.PrefetchScalarGridSpec(
            num_scalar_prefetch=1,
            grid=(1,),
            in_specs=[
                pl.BlockSpec((B_pad, H), lambda i, idx_ref: (0, 0)),
                pl.BlockSpec(memory_space=pl.ANY),      # w_ih stays in HBM
                pl.BlockSpec((H, threeH), lambda i, idx_ref: (0, 0)),
                pl.BlockSpec((1, threeH), lambda i, idx_ref: (0, 0)),
                pl.BlockSpec((1, threeH), lambda i, idx_ref: (0, 0)),
            ],
            out_specs=pl.BlockSpec((B_pad, H), lambda i, idx_ref: (0, 0)),
            scratch_shapes=[
                pltpu.VMEM((B_pad, threeH), jnp.float32),
                pltpu.SemaphoreType.DMA((B_pad,)),
            ],
        ),
        compiler_params=pltpu.CompilerParams(
            dimension_semantics=("arbitrary",)),
    )(idx_i32, h0, params["w_ih_t"], params["w_hh_t"],
      params["b_ih"], params["b_hh"])
    # TODO(synk): alias h0 -> h_new via input_output_aliases once the caller
    # donates the hidden buffer (session-loop decoding); without donation it
    # is neutral, so it is left off here.
    # TODO(synk): the cell (~0.8 MFLOP) could be fused into the h2o kernel
    # (computed redundantly per OUT tile) to save one kernel launch; kept
    # split here for megacore safety and clarity.

    # ---------------- h2o projection, tiled over OUT ----------------
    OUT_pad = _round_up(OUT, 128)
    TN = _round_up(min(tn, OUT_pad), 128)      # lane-dense output tiles
    OUT_pad = _round_up(OUT_pad, TN)
    w_ho = params["w_ho_t"]
    b_ho = params["b_ho"]
    if OUT_pad != OUT:
        # TODO(synk): pre-pad (and, on v5e, tile-block) w_ho once outside the
        # decode loop instead of per call.
        w_ho = jnp.pad(w_ho, ((0, 0), (0, OUT_pad - OUT)))
        b_ho = jnp.pad(b_ho, ((0, 0), (0, OUT_pad - OUT)))

    # VMEM budget: double-buffered weight/output/bias tiles + resident h.
    w_itemsize = jnp.dtype(w_ho.dtype).itemsize
    vmem_need = (2 * H * TN * w_itemsize      # weight tile, double-buffered
                 + 2 * B_pad * TN * 4         # output tile, double-buffered
                 + 2 * TN * 4                 # bias tile
                 + B_pad * H * 4)             # resident h
    vmem_limit = int(min(48 * 2**20, max(32 * 2**20, 2 * vmem_need)))

    logit = pl.pallas_call(
        h2o_kernel,
        out_shape=jax.ShapeDtypeStruct((B_pad, OUT_pad), jnp.float32),
        grid_spec=pltpu.PrefetchScalarGridSpec(
            num_scalar_prefetch=0,
            grid=(OUT_pad // TN,),
            in_specs=[
                pl.BlockSpec((B_pad, H), lambda j: (0, 0)),
                pl.BlockSpec((H, TN), lambda j: (0, j)),
                pl.BlockSpec((1, TN), lambda j: (0, j)),
            ],
            out_specs=pl.BlockSpec((B_pad, TN), lambda j: (0, j)),
        ),
        compiler_params=pltpu.CompilerParams(
            dimension_semantics=("parallel",),   # v7x megacore shards OUT tiles
            vmem_limit_bytes=vmem_limit),
    )(h_new, w_ho, b_ho)

    return logit[:B, :OUT], h_new[:B][None]   # hidden back to (1, B, H)


def make_params(key, input_size, hidden_size, output_size):
    """Deterministic init mimicking PyTorch uniform(-1/sqrt(H), 1/sqrt(H))."""
    ks = jax.random.split(key, 6)
    bound = 1.0 / np.sqrt(hidden_size)

    def u(k, shape):
        return jax.random.uniform(k, shape, jnp.float32, -bound, bound)

    return {
        # GRU: weight_ih_l0 (3H, IN) -> transposed (IN, 3H); same for hh.
        "w_ih_t": u(ks[0], (input_size, 3 * hidden_size)),
        "w_hh_t": u(ks[1], (hidden_size, 3 * hidden_size)),
        "b_ih": u(ks[2], (1, 3 * hidden_size)),
        "b_hh": u(ks[3], (1, 3 * hidden_size)),
        # h2o Linear: weight (OUT, H) -> transposed (H, OUT).
        "w_ho_t": u(ks[4], (hidden_size, output_size)),
        "b_ho": u(ks[5], (1, output_size)),
    }


def gru4rec_reference(idx, hidden, params):
    """Plain-JAX reference of the same forward pass (for validation)."""
    H = params["w_hh_t"].shape[0]
    h_prev = hidden[0]
    # one-hot @ w_ih  ==  row gather of w_ih
    gi = jnp.take(params["w_ih_t"], idx, axis=0) + params["b_ih"]
    gh = h_prev @ params["w_hh_t"] + params["b_hh"]
    i_r, i_z, i_n = gi[:, :H], gi[:, H:2 * H], gi[:, 2 * H:]
    h_r, h_z, h_n = gh[:, :H], gh[:, H:2 * H], gh[:, 2 * H:]
    r = jax.nn.sigmoid(i_r + h_r)
    z = jax.nn.sigmoid(i_z + h_z)
    n = jnp.tanh(i_n + r * h_n)
    h_new = (1.0 - z) * n + z * h_prev
    logit = jnp.tanh(h_new @ params["w_ho_t"].astype(jnp.float32) + params["b_ho"])
    return logit, h_new[None]


if __name__ == "__main__":
    batch_size = 8
    input_size = 256      # number of items
    output_size = 256     # GRU4REC convention: output_size == input_size
    hidden_size = 128
    num_layers = 1

    key = jax.random.PRNGKey(0)
    k_params, k_idx = jax.random.split(key)
    params = make_params(k_params, input_size, hidden_size, output_size)

    idx = jax.random.randint(k_idx, (batch_size,), 0, input_size, jnp.int32)
    hidden0 = jnp.zeros((num_layers, batch_size, hidden_size), jnp.float32)

    fwd = jax.jit(gru4rec_forward)

    # Exact f32 path.
    logit, hidden1 = fwd(idx, hidden0, params)
    logit = jax.block_until_ready(logit)
    hidden1 = jax.block_until_ready(hidden1)

    ref_logit, ref_hidden = gru4rec_reference(idx, hidden0, params)
    np.testing.assert_allclose(np.asarray(logit), np.asarray(ref_logit),
                               rtol=1e-5, atol=1e-5)
    np.testing.assert_allclose(np.asarray(hidden1), np.asarray(ref_hidden),
                               rtol=1e-5, atol=1e-5)
    assert logit.shape == (batch_size, output_size)
    assert hidden1.shape == (num_layers, batch_size, hidden_size)

    # bf16 h2o weights (halves HBM bytes of the memory-bound projection).
    params_bf16 = dict(params, w_ho_t=params["w_ho_t"].astype(jnp.bfloat16))
    logit_bf16, hidden1_bf16 = fwd(idx, hidden0, params_bf16)
    logit_bf16 = jax.block_until_ready(logit_bf16)
    jax.block_until_ready(hidden1_bf16)
    np.testing.assert_allclose(np.asarray(logit_bf16), np.asarray(ref_logit),
                               rtol=0, atol=3e-2)

    print("KERNEL_OK")
</pallas_src>

<mosaic_0001>
module attributes {stable_mosaic.version = 11 : i64} {
  func.func @gru_cell_kernel(%arg0: i32, %arg1: memref<8xi32, #tpu.memory_space<smem>>, %arg2: memref<8x128xf32, #tpu.memory_space<vmem>>, %arg3: memref<256x384xf32, #tpu.memory_space<any>>, %arg4: memref<128x384xf32, #tpu.memory_space<vmem>>, %arg5: memref<1x384xf32, #tpu.memory_space<vmem>>, %arg6: memref<1x384xf32, #tpu.memory_space<vmem>>, %arg7: memref<8x128xf32, #tpu.memory_space<vmem>>, %arg8: memref<8x384xf32, #tpu.memory_space<vmem>>, %arg9: memref<8x!tpu.dma_semaphore, #tpu.memory_space<semaphore_mem>>) attributes {dimension_semantics = [#tpu.dimension_semantics<arbitrary>], iteration_bounds = array<i64: 1>, scalar_prefetch = 1 : i64, scratch_operands = 2 : i64, tpu.core_type = #tpu.core_type<tc>, window_params = [{pipeline_mode = #tpu.pipeline_mode<synchronous>, transform_indices = @transform_0, window_bounds = array<i64: 8, 128>}, {}, {pipeline_mode = #tpu.pipeline_mode<synchronous>, transform_indices = @transform_2, window_bounds = array<i64: 128, 384>}, {pipeline_mode = #tpu.pipeline_mode<synchronous>, transform_indices = @transform_3, window_bounds = array<i64: 1, 384>}, {pipeline_mode = #tpu.pipeline_mode<synchronous>, transform_indices = @transform_4, window_bounds = array<i64: 1, 384>}, {pipeline_mode = #tpu.pipeline_mode<synchronous>, transform_indices = @transform_5, window_bounds = array<i64: 8, 128>}]} {
    %c0 = arith.constant 0 : index
    %0 = memref.load %arg1[%c0] : memref<8xi32, #tpu.memory_space<smem>>
    %c0_i32 = arith.constant 0 : i32
    %c0_i32_0 = arith.constant 0 : i32
    %1 = tpu.memref_slice %arg3[%0, %c0_i32_0] : memref<256x384xf32, #tpu.memory_space<any>> -> memref<1x384xf32, #tpu.memory_space<any>>
    %c0_i32_1 = arith.constant 0 : i32
    %c0_i32_2 = arith.constant 0 : i32
    %2 = tpu.memref_slice %arg8[%c0_i32_1, %c0_i32_2] : memref<8x384xf32, #tpu.memory_space<vmem>> -> memref<1x384xf32, #tpu.memory_space<vmem>>
    %3 = tpu.memref_slice %arg9[%c0_i32] : memref<8x!tpu.dma_semaphore, #tpu.memory_space<semaphore_mem>> -> memref<1x!tpu.dma_semaphore, #tpu.memory_space<semaphore_mem>>
    %4 = tpu.memref_squeeze %3 : memref<1x!tpu.dma_semaphore, #tpu.memory_space<semaphore_mem>> -> memref<!tpu.dma_semaphore, #tpu.memory_space<semaphore_mem>>
    tpu.enqueue_dma source(%1 : memref<1x384xf32, #tpu.memory_space<any>>) target(%2 : memref<1x384xf32, #tpu.memory_space<vmem>>) target_semaphore(%4 : memref<!tpu.dma_semaphore, #tpu.memory_space<semaphore_mem>>)
    %c1 = arith.constant 1 : index
    %5 = memref.load %arg1[%c1] : memref<8xi32, #tpu.memory_space<smem>>
    %c1_i32 = arith.constant 1 : i32
    %c0_i32_3 = arith.constant 0 : i32
    %6 = tpu.memref_slice %arg3[%5, %c0_i32_3] : memref<256x384xf32, #tpu.memory_space<any>> -> memref<1x384xf32, #tpu.memory_space<any>>
    %c1_i32_4 = arith.constant 1 : i32
    %c0_i32_5 = arith.constant 0 : i32
    %7 = tpu.memref_slice %arg8[%c1_i32_4, %c0_i32_5] : memref<8x384xf32, #tpu.memory_space<vmem>> -> memref<1x384xf32, #tpu.memory_space<vmem>>
    %8 = tpu.memref_slice %arg9[%c1_i32] : memref<8x!tpu.dma_semaphore, #tpu.memory_space<semaphore_mem>> -> memref<1x!tpu.dma_semaphore, #tpu.memory_space<semaphore_mem>>
    %9 = tpu.memref_squeeze %8 : memref<1x!tpu.dma_semaphore, #tpu.memory_space<semaphore_mem>> -> memref<!tpu.dma_semaphore, #tpu.memory_space<semaphore_mem>>
    tpu.enqueue_dma source(%6 : memref<1x384xf32, #tpu.memory_space<any>>) target(%7 : memref<1x384xf32, #tpu.memory_space<vmem>>) target_semaphore(%9 : memref<!tpu.dma_semaphore, #tpu.memory_space<semaphore_mem>>)
    %c2 = arith.constant 2 : index
    %10 = memref.load %arg1[%c2] : memref<8xi32, #tpu.memory_space<smem>>
    %c2_i32 = arith.constant 2 : i32
    %c0_i32_6 = arith.constant 0 : i32
    %11 = tpu.memref_slice %arg3[%10, %c0_i32_6] : memref<256x384xf32, #tpu.memory_space<any>> -> memref<1x384xf32, #tpu.memory_space<any>>
    %c2_i32_7 = arith.constant 2 : i32
    %c0_i32_8 = arith.constant 0 : i32
    %12 = tpu.memref_slice %arg8[%c2_i32_7, %c0_i32_8] : memref<8x384xf32, #tpu.memory_space<vmem>> -> memref<1x384xf32, #tpu.memory_space<vmem>>
    %13 = tpu.memref_slice %arg9[%c2_i32] : memref<8x!tpu.dma_semaphore, #tpu.memory_space<semaphore_mem>> -> memref<1x!tpu.dma_semaphore, #tpu.memory_space<semaphore_mem>>
    %14 = tpu.memref_squeeze %13 : memref<1x!tpu.dma_semaphore, #tpu.memory_space<semaphore_mem>> -> memref<!tpu.dma_semaphore, #tpu.memory_space<semaphore_mem>>
    tpu.enqueue_dma source(%11 : memref<1x384xf32, #tpu.memory_space<any>>) target(%12 : memref<1x384xf32, #tpu.memory_space<vmem>>) target_semaphore(%14 : memref<!tpu.dma_semaphore, #tpu.memory_space<semaphore_mem>>)
    %c3 = arith.constant 3 : index
    %15 = memref.load %arg1[%c3] : memref<8xi32, #tpu.memory_space<smem>>
    %c3_i32 = arith.constant 3 : i32
    %c0_i32_9 = arith.constant 0 : i32
    %16 = tpu.memref_slice %arg3[%15, %c0_i32_9] : memref<256x384xf32, #tpu.memory_space<any>> -> memref<1x384xf32, #tpu.memory_space<any>>
    %c3_i32_10 = arith.constant 3 : i32
    %c0_i32_11 = arith.constant 0 : i32
    %17 = tpu.memref_slice %arg8[%c3_i32_10, %c0_i32_11] : memref<8x384xf32, #tpu.memory_space<vmem>> -> memref<1x384xf32, #tpu.memory_space<vmem>>
    %18 = tpu.memref_slice %arg9[%c3_i32] : memref<8x!tpu.dma_semaphore, #tpu.memory_space<semaphore_mem>> -> memref<1x!tpu.dma_semaphore, #tpu.memory_space<semaphore_mem>>
    %19 = tpu.memref_squeeze %18 : memref<1x!tpu.dma_semaphore, #tpu.memory_space<semaphore_mem>> -> memref<!tpu.dma_semaphore, #tpu.memory_space<semaphore_mem>>
    tpu.enqueue_dma source(%16 : memref<1x384xf32, #tpu.memory_space<any>>) target(%17 : memref<1x384xf32, #tpu.memory_space<vmem>>) target_semaphore(%19 : memref<!tpu.dma_semaphore, #tpu.memory_space<semaphore_mem>>)
    %c4 = arith.constant 4 : index
    %20 = memref.load %arg1[%c4] : memref<8xi32, #tpu.memory_space<smem>>
    %c4_i32 = arith.constant 4 : i32
    %c0_i32_12 = arith.constant 0 : i32
    %21 = tpu.memref_slice %arg3[%20, %c0_i32_12] : memref<256x384xf32, #tpu.memory_space<any>> -> memref<1x384xf32, #tpu.memory_space<any>>
    %c4_i32_13 = arith.constant 4 : i32
    %c0_i32_14 = arith.constant 0 : i32
    %22 = tpu.memref_slice %arg8[%c4_i32_13, %c0_i32_14] : memref<8x384xf32, #tpu.memory_space<vmem>> -> memref<1x384xf32, #tpu.memory_space<vmem>>
    %23 = tpu.memref_slice %arg9[%c4_i32] : memref<8x!tpu.dma_semaphore, #tpu.memory_space<semaphore_mem>> -> memref<1x!tpu.dma_semaphore, #tpu.memory_space<semaphore_mem>>
    %24 = tpu.memref_squeeze %23 : memref<1x!tpu.dma_semaphore, #tpu.memory_space<semaphore_mem>> -> memref<!tpu.dma_semaphore, #tpu.memory_space<semaphore_mem>>
    tpu.enqueue_dma source(%21 : memref<1x384xf32, #tpu.memory_space<any>>) target(%22 : memref<1x384xf32, #tpu.memory_space<vmem>>) target_semaphore(%24 : memref<!tpu.dma_semaphore, #tpu.memory_space<semaphore_mem>>)
    %c5 = arith.constant 5 : index
    %25 = memref.load %arg1[%c5] : memref<8xi32, #tpu.memory_space<smem>>
    %c5_i32 = arith.constant 5 : i32
    %c0_i32_15 = arith.constant 0 : i32
    %26 = tpu.memref_slice %arg3[%25, %c0_i32_15] : memref<256x384xf32, #tpu.memory_space<any>> -> memref<1x384xf32, #tpu.memory_space<any>>
    %c5_i32_16 = arith.constant 5 : i32
    %c0_i32_17 = arith.constant 0 : i32
    %27 = tpu.memref_slice %arg8[%c5_i32_16, %c0_i32_17] : memref<8x384xf32, #tpu.memory_space<vmem>> -> memref<1x384xf32, #tpu.memory_space<vmem>>
    %28 = tpu.memref_slice %arg9[%c5_i32] : memref<8x!tpu.dma_semaphore, #tpu.memory_space<semaphore_mem>> -> memref<1x!tpu.dma_semaphore, #tpu.memory_space<semaphore_mem>>
    %29 = tpu.memref_squeeze %28 : memref<1x!tpu.dma_semaphore, #tpu.memory_space<semaphore_mem>> -> memref<!tpu.dma_semaphore, #tpu.memory_space<semaphore_mem>>
    tpu.enqueue_dma source(%26 : memref<1x384xf32, #tpu.memory_space<any>>) target(%27 : memref<1x384xf32, #tpu.memory_space<vmem>>) target_semaphore(%29 : memref<!tpu.dma_semaphore, #tpu.memory_space<semaphore_mem>>)
    %c6 = arith.constant 6 : index
    %30 = memref.load %arg1[%c6] : memref<8xi32, #tpu.memory_space<smem>>
    %c6_i32 = arith.constant 6 : i32
    %c0_i32_18 = arith.constant 0 : i32
    %31 = tpu.memref_slice %arg3[%30, %c0_i32_18] : memref<256x384xf32, #tpu.memory_space<any>> -> memref<1x384xf32, #tpu.memory_space<any>>
    %c6_i32_19 = arith.constant 6 : i32
    %c0_i32_20 = arith.constant 0 : i32
    %32 = tpu.memref_slice %arg8[%c6_i32_19, %c0_i32_20] : memref<8x384xf32, #tpu.memory_space<vmem>> -> memref<1x384xf32, #tpu.memory_space<vmem>>
    %33 = tpu.memref_slice %arg9[%c6_i32] : memref<8x!tpu.dma_semaphore, #tpu.memory_space<semaphore_mem>> -> memref<1x!tpu.dma_semaphore, #tpu.memory_space<semaphore_mem>>
    %34 = tpu.memref_squeeze %33 : memref<1x!tpu.dma_semaphore, #tpu.memory_space<semaphore_mem>> -> memref<!tpu.dma_semaphore, #tpu.memory_space<semaphore_mem>>
    tpu.enqueue_dma source(%31 : memref<1x384xf32, #tpu.memory_space<any>>) target(%32 : memref<1x384xf32, #tpu.memory_space<vmem>>) target_semaphore(%34 : memref<!tpu.dma_semaphore, #tpu.memory_space<semaphore_mem>>)
    %c7 = arith.constant 7 : index
    %35 = memref.load %arg1[%c7] : memref<8xi32, #tpu.memory_space<smem>>
    %c7_i32 = arith.constant 7 : i32
    %c0_i32_21 = arith.constant 0 : i32
    %36 = tpu.memref_slice %arg3[%35, %c0_i32_21] : memref<256x384xf32, #tpu.memory_space<any>> -> memref<1x384xf32, #tpu.memory_space<any>>
    %c7_i32_22 = arith.constant 7 : i32
    %c0_i32_23 = arith.constant 0 : i32
    %37 = tpu.memref_slice %arg8[%c7_i32_22, %c0_i32_23] : memref<8x384xf32, #tpu.memory_space<vmem>> -> memref<1x384xf32, #tpu.memory_space<vmem>>
    %38 = tpu.memref_slice %arg9[%c7_i32] : memref<8x!tpu.dma_semaphore, #tpu.memory_space<semaphore_mem>> -> memref<1x!tpu.dma_semaphore, #tpu.memory_space<semaphore_mem>>
    %39 = tpu.memref_squeeze %38 : memref<1x!tpu.dma_semaphore, #tpu.memory_space<semaphore_mem>> -> memref<!tpu.dma_semaphore, #tpu.memory_space<semaphore_mem>>
    tpu.enqueue_dma source(%36 : memref<1x384xf32, #tpu.memory_space<any>>) target(%37 : memref<1x384xf32, #tpu.memory_space<vmem>>) target_semaphore(%39 : memref<!tpu.dma_semaphore, #tpu.memory_space<semaphore_mem>>)
    %c0_24 = arith.constant 0 : index
    %c0_25 = arith.constant 0 : index
    %40 = vector.load %arg2[%c0_24, %c0_25] : memref<8x128xf32, #tpu.memory_space<vmem>>, vector<8x128xf32>
    %c0_26 = arith.constant 0 : index
    %c0_27 = arith.constant 0 : index
    %41 = vector.load %arg4[%c0_26, %c0_27] : memref<128x384xf32, #tpu.memory_space<vmem>>, vector<128x384xf32>
    %cst = arith.constant dense<0.000000e+00> : vector<8x384xf32>
    %42 = tpu.matmul %40, %41, %cst {dimension_numbers = #tpu.dot_dimension_numbers<[1], [0], [0], [1], [0, 0, 1, 1], [], []>} : vector<8x128xf32>, vector<128x384xf32>, vector<8x384xf32> -> vector<8x384xf32>
    %c0_28 = arith.constant 0 : index
    %c0_29 = arith.constant 0 : index
    %43 = vector.load %arg6[%c0_28, %c0_29] : memref<1x384xf32, #tpu.memory_space<vmem>>, vector<1x384xf32>
    %44 = vector.broadcast %43 : vector<1x384xf32> to vector<8x384xf32>
    %45 = arith.addf %42, %44 : vector<8x384xf32>
    %c0_30 = arith.constant 0 : index
    %46 = memref.load %arg1[%c0_30] : memref<8xi32, #tpu.memory_space<smem>>
    %c0_i32_31 = arith.constant 0 : i32
    %c0_i32_32 = arith.constant 0 : i32
    %47 = tpu.memref_slice %arg3[%46, %c0_i32_32] : memref<256x384xf32, #tpu.memory_space<any>> -> memref<1x384xf32, #tpu.memory_space<any>>
    %c0_i32_33 = arith.constant 0 : i32
    %c0_i32_34 = arith.constant 0 : i32
    %48 = tpu.memref_slice %arg8[%c0_i32_33, %c0_i32_34] : memref<8x384xf32, #tpu.memory_space<vmem>> -> memref<1x384xf32, #tpu.memory_space<vmem>>
    %49 = tpu.memref_slice %arg9[%c0_i32_31] : memref<8x!tpu.dma_semaphore, #tpu.memory_space<semaphore_mem>> -> memref<1x!tpu.dma_semaphore, #tpu.memory_space<semaphore_mem>>
    %50 = tpu.memref_squeeze %49 : memref<1x!tpu.dma_semaphore, #tpu.memory_space<semaphore_mem>> -> memref<!tpu.dma_semaphore, #tpu.memory_space<semaphore_mem>>
    tpu.wait_dma2 semaphore(%50 : memref<!tpu.dma_semaphore, #tpu.memory_space<semaphore_mem>>) src(%47 : memref<1x384xf32, #tpu.memory_space<any>>) dst(%48 : memref<1x384xf32, #tpu.memory_space<vmem>>)
    %c1_35 = arith.constant 1 : index
    %51 = memref.load %arg1[%c1_35] : memref<8xi32, #tpu.memory_space<smem>>
    %c1_i32_36 = arith.constant 1 : i32
    %c0_i32_37 = arith.constant 0 : i32
    %52 = tpu.memref_slice %arg3[%51, %c0_i32_37] : memref<256x384xf32, #tpu.memory_space<any>> -> memref<1x384xf32, #tpu.memory_space<any>>
    %c1_i32_38 = arith.constant 1 : i32
    %c0_i32_39 = arith.constant 0 : i32
    %53 = tpu.memref_slice %arg8[%c1_i32_38, %c0_i32_39] : memref<8x384xf32, #tpu.memory_space<vmem>> -> memref<1x384xf32, #tpu.memory_space<vmem>>
    %54 = tpu.memref_slice %arg9[%c1_i32_36] : memref<8x!tpu.dma_semaphore, #tpu.memory_space<semaphore_mem>> -> memref<1x!tpu.dma_semaphore, #tpu.memory_space<semaphore_mem>>
    %55 = tpu.memref_squeeze %54 : memref<1x!tpu.dma_semaphore, #tpu.memory_space<semaphore_mem>> -> memref<!tpu.dma_semaphore, #tpu.memory_space<semaphore_mem>>
    tpu.wait_dma2 semaphore(%55 : memref<!tpu.dma_semaphore, #tpu.memory_space<semaphore_mem>>) src(%52 : memref<1x384xf32, #tpu.memory_space<any>>) dst(%53 : memref<1x384xf32, #tpu.memory_space<vmem>>)
    %c2_40 = arith.constant 2 : index
    %56 = memref.load %arg1[%c2_40] : memref<8xi32, #tpu.memory_space<smem>>
    %c2_i32_41 = arith.constant 2 : i32
    %c0_i32_42 = arith.constant 0 : i32
    %57 = tpu.memref_slice %arg3[%56, %c0_i32_42] : memref<256x384xf32, #tpu.memory_space<any>> -> memref<1x384xf32, #tpu.memory_space<any>>
    %c2_i32_43 = arith.constant 2 : i32
    %c0_i32_44 = arith.constant 0 : i32
    %58 = tpu.memref_slice %arg8[%c2_i32_43, %c0_i32_44] : memref<8x384xf32, #tpu.memory_space<vmem>> -> memref<1x384xf32, #tpu.memory_space<vmem>>
    %59 = tpu.memref_slice %arg9[%c2_i32_41] : memref<8x!tpu.dma_semaphore, #tpu.memory_space<semaphore_mem>> -> memref<1x!tpu.dma_semaphore, #tpu.memory_space<semaphore_mem>>
    %60 = tpu.memref_squeeze %59 : memref<1x!tpu.dma_semaphore, #tpu.memory_space<semaphore_mem>> -> memref<!tpu.dma_semaphore, #tpu.memory_space<semaphore_mem>>
    tpu.wait_dma2 semaphore(%60 : memref<!tpu.dma_semaphore, #tpu.memory_space<semaphore_mem>>) src(%57 : memref<1x384xf32, #tpu.memory_space<any>>) dst(%58 : memref<1x384xf32, #tpu.memory_space<vmem>>)
    %c3_45 = arith.constant 3 : index
    %61 = memref.load %arg1[%c3_45] : memref<8xi32, #tpu.memory_space<smem>>
    %c3_i32_46 = arith.constant 3 : i32
    %c0_i32_47 = arith.constant 0 : i32
    %62 = tpu.memref_slice %arg3[%61, %c0_i32_47] : memref<256x384xf32, #tpu.memory_space<any>> -> memref<1x384xf32, #tpu.memory_space<any>>
    %c3_i32_48 = arith.constant 3 : i32
    %c0_i32_49 = arith.constant 0 : i32
    %63 = tpu.memref_slice %arg8[%c3_i32_48, %c0_i32_49] : memref<8x384xf32, #tpu.memory_space<vmem>> -> memref<1x384xf32, #tpu.memory_space<vmem>>
    %64 = tpu.memref_slice %arg9[%c3_i32_46] : memref<8x!tpu.dma_semaphore, #tpu.memory_space<semaphore_mem>> -> memref<1x!tpu.dma_semaphore, #tpu.memory_space<semaphore_mem>>
    %65 = tpu.memref_squeeze %64 : memref<1x!tpu.dma_semaphore, #tpu.memory_space<semaphore_mem>> -> memref<!tpu.dma_semaphore, #tpu.memory_space<semaphore_mem>>
    tpu.wait_dma2 semaphore(%65 : memref<!tpu.dma_semaphore, #tpu.memory_space<semaphore_mem>>) src(%62 : memref<1x384xf32, #tpu.memory_space<any>>) dst(%63 : memref<1x384xf32, #tpu.memory_space<vmem>>)
    %c4_50 = arith.constant 4 : index
    %66 = memref.load %arg1[%c4_50] : memref<8xi32, #tpu.memory_space<smem>>
    %c4_i32_51 = arith.constant 4 : i32
    %c0_i32_52 = arith.constant 0 : i32
    %67 = tpu.memref_slice %arg3[%66, %c0_i32_52] : memref<256x384xf32, #tpu.memory_space<any>> -> memref<1x384xf32, #tpu.memory_space<any>>
    %c4_i32_53 = arith.constant 4 : i32
    %c0_i32_54 = arith.constant 0 : i32
    %68 = tpu.memref_slice %arg8[%c4_i32_53, %c0_i32_54] : memref<8x384xf32, #tpu.memory_space<vmem>> -> memref<1x384xf32, #tpu.memory_space<vmem>>
    %69 = tpu.memref_slice %arg9[%c4_i32_51] : memref<8x!tpu.dma_semaphore, #tpu.memory_space<semaphore_mem>> -> memref<1x!tpu.dma_semaphore, #tpu.memory_space<semaphore_mem>>
    %70 = tpu.memref_squeeze %69 : memref<1x!tpu.dma_semaphore, #tpu.memory_space<semaphore_mem>> -> memref<!tpu.dma_semaphore, #tpu.memory_space<semaphore_mem>>
    tpu.wait_dma2 semaphore(%70 : memref<!tpu.dma_semaphore, #tpu.memory_space<semaphore_mem>>) src(%67 : memref<1x384xf32, #tpu.memory_space<any>>) dst(%68 : memref<1x384xf32, #tpu.memory_space<vmem>>)
    %c5_55 = arith.constant 5 : index
    %71 = memref.load %arg1[%c5_55] : memref<8xi32, #tpu.memory_space<smem>>
    %c5_i32_56 = arith.constant 5 : i32
    %c0_i32_57 = arith.constant 0 : i32
    %72 = tpu.memref_slice %arg3[%71, %c0_i32_57] : memref<256x384xf32, #tpu.memory_space<any>> -> memref<1x384xf32, #tpu.memory_space<any>>
    %c5_i32_58 = arith.constant 5 : i32
    %c0_i32_59 = arith.constant 0 : i32
    %73 = tpu.memref_slice %arg8[%c5_i32_58, %c0_i32_59] : memref<8x384xf32, #tpu.memory_space<vmem>> -> memref<1x384xf32, #tpu.memory_space<vmem>>
    %74 = tpu.memref_slice %arg9[%c5_i32_56] : memref<8x!tpu.dma_semaphore, #tpu.memory_space<semaphore_mem>> -> memref<1x!tpu.dma_semaphore, #tpu.memory_space<semaphore_mem>>
    %75 = tpu.memref_squeeze %74 : memref<1x!tpu.dma_semaphore, #tpu.memory_space<semaphore_mem>> -> memref<!tpu.dma_semaphore, #tpu.memory_space<semaphore_mem>>
    tpu.wait_dma2 semaphore(%75 : memref<!tpu.dma_semaphore, #tpu.memory_space<semaphore_mem>>) src(%72 : memref<1x384xf32, #tpu.memory_space<any>>) dst(%73 : memref<1x384xf32, #tpu.memory_space<vmem>>)
    %c6_60 = arith.constant 6 : index
    %76 = memref.load %arg1[%c6_60] : memref<8xi32, #tpu.memory_space<smem>>
    %c6_i32_61 = arith.constant 6 : i32
    %c0_i32_62 = arith.constant 0 : i32
    %77 = tpu.memref_slice %arg3[%76, %c0_i32_62] : memref<256x384xf32, #tpu.memory_space<any>> -> memref<1x384xf32, #tpu.memory_space<any>>
    %c6_i32_63 = arith.constant 6 : i32
    %c0_i32_64 = arith.constant 0 : i32
    %78 = tpu.memref_slice %arg8[%c6_i32_63, %c0_i32_64] : memref<8x384xf32, #tpu.memory_space<vmem>> -> memref<1x384xf32, #tpu.memory_space<vmem>>
    %79 = tpu.memref_slice %arg9[%c6_i32_61] : memref<8x!tpu.dma_semaphore, #tpu.memory_space<semaphore_mem>> -> memref<1x!tpu.dma_semaphore, #tpu.memory_space<semaphore_mem>>
    %80 = tpu.memref_squeeze %79 : memref<1x!tpu.dma_semaphore, #tpu.memory_space<semaphore_mem>> -> memref<!tpu.dma_semaphore, #tpu.memory_space<semaphore_mem>>
    tpu.wait_dma2 semaphore(%80 : memref<!tpu.dma_semaphore, #tpu.memory_space<semaphore_mem>>) src(%77 : memref<1x384xf32, #tpu.memory_space<any>>) dst(%78 : memref<1x384xf32, #tpu.memory_space<vmem>>)
    %c7_65 = arith.constant 7 : index
    %81 = memref.load %arg1[%c7_65] : memref<8xi32, #tpu.memory_space<smem>>
    %c7_i32_66 = arith.constant 7 : i32
    %c0_i32_67 = arith.constant 0 : i32
    %82 = tpu.memref_slice %arg3[%81, %c0_i32_67] : memref<256x384xf32, #tpu.memory_space<any>> -> memref<1x384xf32, #tpu.memory_space<any>>
    %c7_i32_68 = arith.constant 7 : i32
    %c0_i32_69 = arith.constant 0 : i32
    %83 = tpu.memref_slice %arg8[%c7_i32_68, %c0_i32_69] : memref<8x384xf32, #tpu.memory_space<vmem>> -> memref<1x384xf32, #tpu.memory_space<vmem>>
    %84 = tpu.memref_slice %arg9[%c7_i32_66] : memref<8x!tpu.dma_semaphore, #tpu.memory_space<semaphore_mem>> -> memref<1x!tpu.dma_semaphore, #tpu.memory_space<semaphore_mem>>
    %85 = tpu.memref_squeeze %84 : memref<1x!tpu.dma_semaphore, #tpu.memory_space<semaphore_mem>> -> memref<!tpu.dma_semaphore, #tpu.memory_space<semaphore_mem>>
    tpu.wait_dma2 semaphore(%85 : memref<!tpu.dma_semaphore, #tpu.memory_space<semaphore_mem>>) src(%82 : memref<1x384xf32, #tpu.memory_space<any>>) dst(%83 : memref<1x384xf32, #tpu.memory_space<vmem>>)
    %c0_70 = arith.constant 0 : index
    %c0_71 = arith.constant 0 : index
    %86 = vector.load %arg8[%c0_70, %c0_71] : memref<8x384xf32, #tpu.memory_space<vmem>>, vector<8x384xf32>
    %c0_72 = arith.constant 0 : index
    %c0_73 = arith.constant 0 : index
    %87 = vector.load %arg5[%c0_72, %c0_73] : memref<1x384xf32, #tpu.memory_space<vmem>>, vector<1x384xf32>
    %88 = vector.broadcast %87 : vector<1x384xf32> to vector<8x384xf32>
    %89 = arith.addf %86, %88 : vector<8x384xf32>
    %c0_74 = arith.constant 0 : index
    %c0_75 = arith.constant 0 : index
    %90 = vector.load %arg2[%c0_74, %c0_75] : memref<8x128xf32, #tpu.memory_space<vmem>>, vector<8x128xf32>
    %91 = vector.extract_strided_slice %89 {offsets = [0, 0], sizes = [8, 128], strides = [1, 1]} : vector<8x384xf32> to vector<8x128xf32>
    %92 = vector.extract_strided_slice %89 {offsets = [0, 128], sizes = [8, 128], strides = [1, 1]} : vector<8x384xf32> to vector<8x128xf32>
    %93 = vector.extract_strided_slice %89 {offsets = [0, 256], sizes = [8, 128], strides = [1, 1]} : vector<8x384xf32> to vector<8x128xf32>
    %94 = vector.extract_strided_slice %45 {offsets = [0, 0], sizes = [8, 128], strides = [1, 1]} : vector<8x384xf32> to vector<8x128xf32>
    %95 = vector.extract_strided_slice %45 {offsets = [0, 128], sizes = [8, 128], strides = [1, 1]} : vector<8x384xf32> to vector<8x128xf32>
    %96 = vector.extract_strided_slice %45 {offsets = [0, 256], sizes = [8, 128], strides = [1, 1]} : vector<8x384xf32> to vector<8x128xf32>
    %97 = arith.addf %91, %94 : vector<8x128xf32>
    %98 = arith.negf %97 : vector<8x128xf32>
    %99 = math.exp %98 : vector<8x128xf32>
    %cst_76 = arith.constant 1.000000e+00 : f32
    %100 = vector.broadcast %cst_76 : f32 to vector<8x128xf32>
    %101 = arith.addf %100, %99 : vector<8x128xf32>
    %102 = arith.divf %100, %101 : vector<8x128xf32>
    %103 = arith.addf %92, %95 : vector<8x128xf32>
    %104 = arith.negf %103 : vector<8x128xf32>
    %105 = math.exp %104 : vector<8x128xf32>
    %cst_77 = arith.constant 1.000000e+00 : f32
    %106 = vector.broadcast %cst_77 : f32 to vector<8x128xf32>
    %107 = arith.addf %106, %105 : vector<8x128xf32>
    %108 = arith.divf %106, %107 : vector<8x128xf32>
    %109 = arith.mulf %102, %96 : vector<8x128xf32>
    %110 = arith.addf %93, %109 : vector<8x128xf32>
    %111 = math.tanh %110 : vector<8x128xf32>
    %cst_78 = arith.constant 1.000000e+00 : f32
    %112 = vector.broadcast %cst_78 : f32 to vector<8x128xf32>
    %113 = arith.subf %112, %108 : vector<8x128xf32>
    %114 = arith.mulf %113, %111 : vector<8x128xf32>
    %115 = arith.mulf %108, %90 : vector<8x128xf32>
    %116 = arith.addf %114, %115 : vector<8x128xf32>
    %c0_79 = arith.constant 0 : index
    %c0_80 = arith.constant 0 : index
    %117 = vector.load %arg7[%c0_79, %c0_80] : memref<8x128xf32, #tpu.memory_space<vmem>>, vector<8x128xf32>
    tpu.vector_store %arg7[%c0_79, %c0_80], %116 {strides = array<i32>} : memref<8x128xf32, #tpu.memory_space<vmem>>, vector<8x128xf32>,
    return
  }
  func.func @transform_0(%arg0: i32, %arg1: memref<8xi32, #tpu.memory_space<smem>>) -> (i32, i32) {
    %c0_i32 = arith.constant 0 : i32
    %c0_i32_0 = arith.constant 0 : i32
    %c0_i32_1 = arith.constant 0 : i32
    return %c0_i32, %c0_i32_0 : i32, i32
  }
  func.func @transform_2(%arg0: i32, %arg1: memref<8xi32, #tpu.memory_space<smem>>) -> (i32, i32) {
    %c0_i32 = arith.constant 0 : i32
    %c0_i32_0 = arith.constant 0 : i32
    %c0_i32_1 = arith.constant 0 : i32
    return %c0_i32, %c0_i32_0 : i32, i32
  }
  func.func @transform_3(%arg0: i32, %arg1: memref<8xi32, #tpu.memory_space<smem>>) -> (i32, i32) {
    %c0_i32 = arith.constant 0 : i32
    %c0_i32_0 = arith.constant 0 : i32
    %c0_i32_1 = arith.constant 0 : i32
    return %c0_i32, %c0_i32_0 : i32, i32
  }
  func.func @transform_4(%arg0: i32, %arg1: memref<8xi32, #tpu.memory_space<smem>>) -> (i32, i32) {
    %c0_i32 = arith.constant 0 : i32
    %c0_i32_0 = arith.constant 0 : i32
    %c0_i32_1 = arith.constant 0 : i32
    return %c0_i32, %c0_i32_0 : i32, i32
  }
  func.func @transform_5(%arg0: i32, %arg1: memref<8xi32, #tpu.memory_space<smem>>) -> (i32, i32) {
    %c0_i32 = arith.constant 0 : i32
    %c0_i32_0 = arith.constant 0 : i32
    %c0_i32_1 = arith.constant 0 : i32
    return %c0_i32, %c0_i32_0 : i32, i32
  }
}

module attributes {stable_mosaic.version = 11 : i64} {
  func.func @h2o_kernel(%arg0: i32, %arg1: memref<8x128xf32, #tpu.memory_space<vmem>>, %arg2: memref<128x256xf32, #tpu.memory_space<vmem>>, %arg3: memref<1x256xf32, #tpu.memory_space<vmem>>, %arg4: memref<8x256xf32, #tpu.memory_space<vmem>>) attributes {dimension_semantics = [#tpu.dimension_semantics<parallel>], iteration_bounds = array<i64: 1>, scalar_prefetch = 0 : i64, scratch_operands = 0 : i64, tpu.core_type = #tpu.core_type<tc>, window_params = [{pipeline_mode = #tpu.pipeline_mode<synchronous>, transform_indices = @transform_0, window_bounds = array<i64: 8, 128>}, {transform_indices = @transform_1, window_bounds = array<i64: 128, 256>}, {transform_indices = @transform_2, window_bounds = array<i64: 1, 256>}, {transform_indices = @transform_3, window_bounds = array<i64: 8, 256>}]} {
    %c0 = arith.constant 0 : index
    %c0_0 = arith.constant 0 : index
    %0 = vector.load %arg1[%c0, %c0_0] : memref<8x128xf32, #tpu.memory_space<vmem>>, vector<8x128xf32>
    %c0_1 = arith.constant 0 : index
    %c0_2 = arith.constant 0 : index
    %1 = vector.load %arg2[%c0_1, %c0_2] : memref<128x256xf32, #tpu.memory_space<vmem>>, vector<128x256xf32>
    %cst = arith.constant dense<0.000000e+00> : vector<8x256xf32>
    %2 = tpu.matmul %0, %1, %cst {dimension_numbers = #tpu.dot_dimension_numbers<[1], [0], [0], [1], [0, 0, 1, 1], [], []>} : vector<8x128xf32>, vector<128x256xf32>, vector<8x256xf32> -> vector<8x256xf32>
    %c0_3 = arith.constant 0 : index
    %c0_4 = arith.constant 0 : index
    %3 = vector.load %arg3[%c0_3, %c0_4] : memref<1x256xf32, #tpu.memory_space<vmem>>, vector<1x256xf32>
    %4 = vector.broadcast %3 : vector<1x256xf32> to vector<8x256xf32>
    %5 = arith.addf %2, %4 : vector<8x256xf32>
    %6 = math.tanh %5 : vector<8x256xf32>
    %c0_5 = arith.constant 0 : index
    %c0_6 = arith.constant 0 : index
    %7 = vector.load %arg4[%c0_5, %c0_6] : memref<8x256xf32, #tpu.memory_space<vmem>>, vector<8x256xf32>
    tpu.vector_store %arg4[%c0_5, %c0_6], %6 {strides = array<i32>} : memref<8x256xf32, #tpu.memory_space<vmem>>, vector<8x256xf32>,
    return
  }
  func.func @transform_0(%arg0: i32) -> (i32, i32) {
    %c0_i32 = arith.constant 0 : i32
    %c0_i32_0 = arith.constant 0 : i32
    %c0_i32_1 = arith.constant 0 : i32
    return %c0_i32, %c0_i32_0 : i32, i32
  }
  func.func @transform_1(%arg0: i32) -> (i32, i32) {
    %c0_i32 = arith.constant 0 : i32
    %c0_i32_0 = arith.constant 0 : i32
    return %c0_i32, %arg0 : i32, i32
  }
  func.func @transform_2(%arg0: i32) -> (i32, i32) {
    %c0_i32 = arith.constant 0 : i32
    %c0_i32_0 = arith.constant 0 : i32
    return %c0_i32, %arg0 : i32, i32
  }
  func.func @transform_3(%arg0: i32) -> (i32, i32) {
    %c0_i32 = arith.constant 0 : i32
    %c0_i32_0 = arith.constant 0 : i32
    return %c0_i32, %arg0 : i32, i32
  }
}

</mosaic_0001>

<bundles_post_ra>
// kernel: gru4rec_forward.3
= control target key start
LH: loop header
LB: loop body
LE: loop exit
PB: predicated region body
PF: predicated region fallthrough
CT: control target
= control target key end

     0   :  { %8 = vsyncpa [#allocation3], 0  ;;  %s227_s0 = inlined_call_operand.vmem [shape: f32[8,128], index: 0, kind: input, shape index: {}]   ;;  %s228_s1 = inlined_call_operand.hbm [shape: f32[128,256], index: 1, kind: input, shape index: {}]   ;;  %s229_s2 = inlined_call_operand.vmem [shape: f32[1,256], index: 2, kind: input, shape index: {}]   ;;  %s230_s3 = inlined_call_operand.hbm [shape: f32[8,256], index: 3, kind: output, shape index: {}]  }
   0x1   :  { %9 = vsyncpa [#allocation4], 0  ;;  %s16_s14 = sshll.u32 %s228_s1, 4  ;;  %s191_s15 = smov [#allocation2]   ;;  %s17_s14 = int_to_ptr.hbm [resolvable:$true] %s16_s14 }
   0x2   :  { %s18_s16 = sshll.u32 %s191_s15, 4  ;;  %s192_s17 = smov 256   ;;  %s19_s16 = int_to_ptr.vmem [resolvable:$true] %s18_s16 }
   0x3   :  { %s193_s18 = smov 16  }
   0x4   :  { %24 = dma.hbm_to_vmem [thread:$0]  %s17_s14, 4096, %s19_s16, [#allocation3], %s192_s17, %s192_s17, %s193_s18  }
   0x5   :  { %187 = dma.done.wait [#allocation3], 4096  }
   0x6   :  { %188 = vsyncadd [#allocation3], 4294963200  ;;  %v62_v0 = vld [vmem:[#allocation2 + $0xf0] sm:$0xff]  ;;  %v63_v1 = vld [vmem:[#allocation2 + $0xf8] sm:$0xff]  ;;  %s194_s22 = smov [#allocation5]   ;;  %s121_s25 = sshll.u32 %s230_s3, 4  ;;  %s122_s25 = int_to_ptr.hbm [resolvable:$true] %s121_s25 }
   0x7   :  { %v60_v2 = vld [vmem:[#allocation2 + $0xe0] sm:$0xff]  ;;  %70 = vmatpush.msra.mxu0 %v62_v0  ;;  %90 = vmatpush.msra.mxu1 %v63_v1  ;;  %v61_v3 = vld [vmem:[#allocation2 + $0xe8] sm:$0xff]  ;;  %v58_v4 = vld [vmem:[#allocation2 + $0xd0] sm:$0xff]  ;;  %s119_s23 = sshll.u32 %s194_s22, 4  ;;  %s120_s23 = int_to_ptr.vmem [resolvable:$true] %s119_s23 }
   0x8   :  { %v59_v5 = vld [vmem:[#allocation2 + $0xd8] sm:$0xff]  ;;  %v56_v6 = vld [vmem:[#allocation2 + $0xc0] sm:$0xff]  ;;  %v57_v7 = vld [vmem:[#allocation2 + $0xc8] sm:$0xff] }
   0x9   :  { %71 = vmatpush.msra.mxu0 %v60_v2  ;;  %91 = vmatpush.msra.mxu1 %v61_v3  ;;  %v54_v8 = vld [vmem:[#allocation2 + $0xb0] sm:$0xff]  ;;  %v55_v9 = vld [vmem:[#allocation2 + $0xb8] sm:$0xff]  ;;  %v52_v10 = vld [vmem:[#allocation2 + $0xa0] sm:$0xff] }
   0xa   :  { %v53_v11 = vld [vmem:[#allocation2 + $0xa8] sm:$0xff]  ;;  %v50_v12 = vld [vmem:[#allocation2 + $0x90] sm:$0xff]  ;;  %v51_v13 = vld [vmem:[#allocation2 + $0x98] sm:$0xff] }
   0xb   :  { %72 = vmatpush.msra.mxu0 %v58_v4  ;;  %92 = vmatpush.msra.mxu1 %v59_v5  ;;  %v48_v14 = vld [vmem:[#allocation2 + $0x80] sm:$0xff]  ;;  %v49_v15 = vld [vmem:[#allocation2 + $0x88] sm:$0xff]  ;;  %v46_v16 = vld [vmem:[#allocation2 + $0x70] sm:$0xff] }
   0xc   :  { %v47_v17 = vld [vmem:[#allocation2 + $0x78] sm:$0xff]  ;;  %v44_v18 = vld [vmem:[#allocation2 + $0x60] sm:$0xff]  ;;  %v45_v19 = vld [vmem:[#allocation2 + $0x68] sm:$0xff] }
   0xd   :  { %73 = vmatpush.msra.mxu0 %v56_v6  ;;  %93 = vmatpush.msra.mxu1 %v57_v7  ;;  %v42_v20 = vld [vmem:[#allocation2 + $0x50] sm:$0xff]  ;;  %v43_v21 = vld [vmem:[#allocation2 + $0x58] sm:$0xff]  ;;  %v40_v22 = vld [vmem:[#allocation2 + $0x40] sm:$0xff] }
   0xe   :  { %v41_v23 = vld [vmem:[#allocation2 + $0x48] sm:$0xff]  ;;  %v38_v24 = vld [vmem:[#allocation2 + $0x30] sm:$0xff]  ;;  %v39_v25 = vld [vmem:[#allocation2 + $0x38] sm:$0xff] }
   0xf   :  { %74 = vmatpush.msra.mxu0 %v54_v8  ;;  %94 = vmatpush.msra.mxu1 %v55_v9  ;;  %v36_v26 = vld [vmem:[#allocation2 + $0x20] sm:$0xff]  ;;  %v37_v27 = vld [vmem:[#allocation2 + $0x28] sm:$0xff]  ;;  %v34_v28 = vld [vmem:[#allocation2 + $0x10] sm:$0xff] }
  0x10   :  { %v35_v29 = vld [vmem:[#allocation2 + $0x18] sm:$0xff]  ;;  %v32_v30 = vld [vmem:[#allocation2] sm:$0xff]  ;;  %v33_v31 = vld [vmem:[#allocation2 + $0x8] sm:$0xff] }
  0x11   :  { %75 = vmatpush.msra.mxu0 %v52_v10  ;;  %95 = vmatpush.msra.mxu1 %v53_v11  ;;  %v31_v32 = vld [vmem:[%s227_s0] sm:$0xff] }
  0x12   :  { %v64_v33 = vld [vmem:[%s229_s2] sm:$0x3] }
  0x13   :  { %76 = vmatpush.msra.mxu0 %v50_v12  ;;  %96 = vmatpush.msra.mxu1 %v51_v13  ;;  %v66_v34 = vperm.slane %v64_v33, 0  ;;  %v67_v35 = vperm.slane %v64_v33, 1 }
  0x15   :  { %77 = vmatpush.msra.mxu0 %v48_v14  ;;  %97 = vmatpush.msra.mxu1 %v49_v15 }
  0x17   :  { %78 = vmatpush.msra.mxu0 %v46_v16  ;;  %98 = vmatpush.msra.mxu1 %v47_v17 }
  0x19   :  { %79 = vmatpush.msra.mxu0 %v44_v18  ;;  %99 = vmatpush.msra.mxu1 %v45_v19 }
  0x1b   :  { %80 = vmatpush.msra.mxu0 %v42_v20  ;;  %100 = vmatpush.msra.mxu1 %v43_v21 }
  0x1d   :  { %81 = vmatpush.msra.mxu0 %v40_v22  ;;  %101 = vmatpush.msra.mxu1 %v41_v23 }
  0x1f   :  { %82 = vmatpush.msra.mxu0 %v38_v24  ;;  %102 = vmatpush.msra.mxu1 %v39_v25 }
  0x21   :  { %83 = vmatpush.msra.mxu0 %v36_v26  ;;  %103 = vmatpush.msra.mxu1 %v37_v27 }
  0x23   :  { %84 = vmatpush.msra.mxu0 %v34_v28  ;;  %104 = vmatpush.msra.mxu1 %v35_v29 }
  0x25   :  { %85 = vmatpush.msra.mxu0 %v32_v30  ;;  %105 = vmatpush.msra.mxu1 %v33_v31 }
  0x26   :  { %86 = vmatmul.f32.vlgmr.msra.gmra.mxu0 %v31_v32  ;;  %106 = vmatmul.f32.vlgmr.msra.gmra.mxu1 %v31_v32 }
  0xa3   :  { %v87_v36 = vpop.f32.mrf.mxu0  ;;  %v107_v37 = vpop.f32.mrf.mxu1 }
  0xa4   :  { %v88_v38 = vadd.f32 %v87_v36, %v66_v34  ;;  %v108_v39 = vadd.f32 %v107_v37, %v67_v35 }
  0xa6   :  { %135 = vtanh.f32 %v88_v38 }
  0xa7   :  { %137 = vtanh.f32 %v108_v39 }
  0xac   :  { %v136_v40 = vpop.eup %135 }
  0xad   :  { %v138_v41 = vpop.eup %137  ;;  %112 = vst [vmem:[#allocation5] sm:$0xff] %v136_v40 }
  0xae   :  { %113 = vst [vmem:[#allocation5 + $0x8] sm:$0xff] %v138_v41 }
  0xaf   :  { %124 = dma.vmem_to_hbm [thread:$0]  %s120_s23, 256, %s122_s25, [#allocation4]  }
  0xb0   :  { %189 = dma.done.wait [#allocation4], 256  }
  0xb1   :  { %190 = vsyncadd [#allocation4], 4294967040 }
  0xb2   :  { %129 = vsyncpa [#allocation3], 1 }
  0xb3   :  { %130 = vsyncpa [#allocation4], 1 }

// kernel: gru4rec_forward.2
= control target key start
LH: loop header
LB: loop body
LE: loop exit
PB: predicated region body
PF: predicated region fallthrough
CT: control target
= control target key end

     0   :  { %s827_s24 = smov [#allocation5]   ;;  %s1049_s0 = inlined_call_operand.vmem [shape: s32[8], index: 0, kind: input, shape index: {}]   ;;  %s1050_s1 = inlined_call_operand.hbm [shape: f32[8,128], index: 1, kind: input, shape index: {}]   ;;  %s1051_s2 = inlined_call_operand.hbm [shape: f32[256,384], index: 2, kind: input, shape index: {}]   ;;  %s1052_s3 = inlined_call_operand.hbm [shape: f32[128,384], index: 3, kind: input, shape index: {}]   ;;  %s1053_s4 = inlined_call_operand.vmem [shape: f32[1,384], index: 4, kind: input, shape index: {}]   ;;  %s1054_s5 = inlined_call_operand.hbm [shape: f32[1,384], index: 5, kind: input, shape index: {}]   ;;  %s1055_s6 = inlined_call_operand.vmem [shape: f32[8,128], index: 6, kind: output, shape index: {}]  }
   0x1   :  { %s12_s23 = sshll.u32 %s1049_s0, 4  ;;  %s13_s23 = int_to_ptr.vmem [resolvable:$true] %s12_s23 }
   0x2   :  { %15 = dma.vmem_to_smem %s13_s23, 16, %s827_s24, [#allocation4] }
   0x3   :  { %805 = dma.done.wait [#allocation4], 16 }
   0x4   :  { %806 = vsyncadd [#allocation4], 4294967280 }
   0x5   :  { %18 = sfence }
   0x6   :  { %19 = vsyncpa [#allocation7], 0 }
   0x7   :  { %20 = vsyncpa [#allocation9], 0  ;;  %s36_s27 = sshll.u32 %s1052_s3, 4  ;;  %s828_s28 = smov [#allocation8]   ;;  %s37_s27 = int_to_ptr.hbm [resolvable:$true] %s36_s27 }
   0x8   :  { %s38_s29 = sshll.u32 %s828_s28, 4  ;;  %s26_s0 = sshll.u32 %s1050_s1, 4  ;;  %s39_s29 = int_to_ptr.vmem [resolvable:$true] %s38_s29  ;;  %s27_s0 = int_to_ptr.hbm [resolvable:$true] %s26_s0 }
   0x9   :  { %s829_s8 = smov 384   ;;  %s830_s9 = smov 24  }
   0xa   :  { %44 = dma.hbm_to_vmem [thread:$0]  %s37_s27, 6144, %s39_s29, [#allocation9], %s829_s8, %s829_s8, %s830_s9  }
   0xb   :  { %s831_s10 = smov [#allocation6]   ;;  %s52_s14 = sshll.u32 %s1054_s5, 4  ;;  %s53_s14 = int_to_ptr.hbm [resolvable:$true] %s52_s14 }
   0xc   :  { %s28_s11 = sshll.u32 %s831_s10, 4  ;;  %s832_s3 = smov [#allocation10]   ;;  %s29_s11 = int_to_ptr.vmem [resolvable:$true] %s28_s11 }
   0xd   :  { %31 = dma.hbm_to_vmem [thread:$0]  %s27_s0, 128, %s29_s11, [#allocation7]  }
   0xe   :  { %s54_s15 = sshll.u32 %s832_s3, 4  ;;  %s55_s15 = int_to_ptr.vmem [resolvable:$true] %s54_s15 }
   0xf   :  { %57 = dma.hbm_to_vmem [thread:$0]  %s53_s14, 48, %s55_s15, [#allocation9]  }
  0x10   :  { %807 = dma.done.wait [#allocation7], 128  }
  0x11   :  { %808 = vsyncadd [#allocation7], 4294967168 }
  0x12   :  { %809 = dma.done.wait [#allocation9], 6192  }
  0x13   :  { %810 = vsyncadd [#allocation9], 4294961104  ;;  %s890_s1 = sld [smem:[#allocation5]]  ;;  %s833_s16 = smov [#allocation2]   ;;  %v244_v0 = vld [vmem:[#allocation8 + $0x178] sm:$0xff]  ;;  %v241_v1 = vld [vmem:[#allocation8 + $0x160] sm:$0xff] }
  0x14   :  { %s892_s17 = sshll.u32 %s833_s16, 4  ;;  %s895_s5 = sld [smem:[#allocation5 + $0x1]]  ;;  %293 = vmatpush.msra.mxu2 %v244_v0  ;;  %v242_v2 = vld [vmem:[#allocation8 + $0x168] sm:$0xff]  ;;  %v243_v3 = vld [vmem:[#allocation8 + $0x170] sm:$0xff]  ;;  %v240_v6 = vld [vmem:[#allocation8 + $0x158] sm:$0xff]  ;;  %s79_s17 = int_to_ptr.vmem [resolvable:$true] %s892_s17 }
  0x15   :  { %s834_s18 = smov [#allocation2 + $0x1]   ;;  %s899_s20 = sld [smem:[#allocation5 + $0x2]]  ;;  %v238_v4 = vld [vmem:[#allocation8 + $0x148] sm:$0xff]  ;;  %253 = vmatpush.msra.mxu0 %v242_v2  ;;  %273 = vmatpush.msra.mxu1 %v243_v3  ;;  %v239_v5 = vld [vmem:[#allocation8 + $0x150] sm:$0xff]  ;;  %v236_v7 = vld [vmem:[#allocation8 + $0x138] sm:$0xff] }
  0x16   :  { %s897_s19 = sshll.u32 %s834_s18, 4  ;;  %s835_s21 = smov [#allocation2 + $0x2]   ;;  %294 = vmatpush.msra.mxu2 %v241_v1  ;;  %v237_v8 = vld [vmem:[#allocation8 + $0x140] sm:$0xff]  ;;  %v235_v9 = vld [vmem:[#allocation8 + $0x130] sm:$0xff]  ;;  %v234_v11 = vld [vmem:[#allocation8 + $0x128] sm:$0xff]  ;;  %s95_s19 = int_to_ptr.vmem [resolvable:$true] %s897_s19 }
  0x17   :  { %s902_s22 = sshll.u32 %s835_s21, 4  ;;  %s904_s23 = sld [smem:[#allocation5 + $0x3]]  ;;  %254 = vmatpush.msra.mxu0 %v239_v5  ;;  %274 = vmatpush.msra.mxu1 %v240_v6  ;;  %v233_v10 = vld [vmem:[#allocation8 + $0x120] sm:$0xff]  ;;  %v232_v12 = vld [vmem:[#allocation8 + $0x118] sm:$0xff]  ;;  %v230_v13 = vld [vmem:[#allocation8 + $0x108] sm:$0xff]  ;;  %s111_s22 = int_to_ptr.vmem [resolvable:$true] %s902_s22 }
  0x18   :  { %295 = vmatpush.msra.mxu2 %v238_v4  ;;  %v231_v14 = vld [vmem:[#allocation8 + $0x110] sm:$0xff] }
  0x19   :  { %s71_s24 = sshrl.u32 %s890_s1, 3  ;;  %s72_s25 = sand.u32 7, %s890_s1   ;;  %255 = vmatpush.msra.mxu0 %v236_v7  ;;  %275 = vmatpush.msra.mxu1 %v237_v8 }
  0x1a   :  { %s73_s26 = smul.u32 24, %s71_s24  ;;  %s85_s27 = sshrl.u32 %s895_s5, 3  ;;  %296 = vmatpush.msra.mxu2 %v235_v9 }
  0x1b   :  { %s86_s28 = sand.u32 7, %s895_s5   ;;  %s87_s30 = smul.u32 24, %s85_s27 }
  0x1c   :  { %s74_s29 = sadd.s32 %s73_s26, %s72_s25  ;;  %s101_s9 = sshrl.u32 %s899_s20, 3 }
  0x1d   :  { %s75_s8 = scalar_lea.hbm %s1051_s2, %s74_s29  ;;  %s88_s11 = sadd.s32 %s87_s30, %s86_s28 }
  0x1e   :  { %s76_s10 = sshll.u32 %s75_s8, 4  ;;  %s89_s14 = scalar_lea.hbm %s1051_s2, %s88_s11  ;;  %s77_s10 = int_to_ptr.hbm [resolvable:$true] %s76_s10 }
  0x1f   :  { %s613_s3 = sshra.s32 %s77_s10, 4  ;;  %s921_s5 = scalar_lea.hbm %s1051_s2, 768  ;;  %s614_s3 = int_to_ptr.hbm [resolvable:$true] %s613_s3 }
  0x20   :  { %s615_s15 = scalar_lea.hbm %s614_s3, 3  ;;  %p618_p1 = scmp.lt.s32.totalorder %s614_s3, %s1051_s2 }
  0x21   :  { %p616_p0 = scmp.ne.s32.totalorder %s614_s3, %s615_s15  ;;  %p619_p2 = scmp.lt.s32.totalorder %s921_s5, %s615_s15 }
  0x23   :  { %p620_p3 = por %p619_p2, %p618_p1 }
  0x25   :  { %p621_p4 = pnand %p620_p3, %p616_p0 }
  0x27   :  { %624 = shalt.err (!%p621_p4)  }
  0x28   :  { %s836_s24 = smov 128   ;;  %s837_s25 = smov 1   ;;  %v229_v15 = vld [vmem:[#allocation8 + $0x100] sm:$0xff]  ;;  %256 = vmatpush.msra.mxu0 %v233_v10  ;;  %276 = vmatpush.msra.mxu1 %v234_v11  ;;  %v227_v16 = vld [vmem:[#allocation8 + $0xf0] sm:$0xff]  ;;  %v228_v17 = vld [vmem:[#allocation8 + $0xf8] sm:$0xff] }
  0x29   :  { %83 = dma.hbm_to_vmem [thread:$0]  %s77_s10, 48, %s79_s17, [#allocation3], %s836_s24, %s836_s24, %s837_s25  ;;  %297 = vmatpush.msra.mxu2 %v232_v12  ;;  %v226_v18 = vld [vmem:[#allocation8 + $0xe8] sm:$0xff] }
  0x2a   :  { %s92_s26 = sshll.u32 %s89_s14, 4  ;;  %s102_s27 = sand.u32 7, %s899_s20   ;;  %257 = vmatpush.msra.mxu0 %v230_v13  ;;  %277 = vmatpush.msra.mxu1 %v231_v14  ;;  %s93_s26 = int_to_ptr.hbm [resolvable:$true] %s92_s26 }
  0x2b   :  { %s103_s28 = smul.u32 24, %s101_s9  ;;  %s637_s29 = sshra.s32 %s93_s26, 4  ;;  %s638_s29 = int_to_ptr.hbm [resolvable:$true] %s637_s29 }
  0x2c   :  { %s639_s30 = scalar_lea.hbm %s638_s29, 3  ;;  %p642_p6 = scmp.lt.s32.totalorder %s638_s29, %s1051_s2 }
  0x2d   :  { %p640_p5 = scmp.ne.s32.totalorder %s638_s29, %s639_s30  ;;  %p643_p7 = scmp.lt.s32.totalorder %s921_s5, %s639_s30 }
  0x2f   :  { %p644_p8 = por %p643_p7, %p642_p6 }
  0x31   :  { %p645_p9 = pnand %p644_p8, %p640_p5 }
  0x33   :  { %648 = shalt.err (!%p645_p9)  }
  0x34   :  { %99 = dma.hbm_to_vmem [thread:$0]  %s93_s26, 48, %s95_s19, [#allocation3 + $0x1], %s836_s24, %s836_s24, %s837_s25  ;;  %298 = vmatpush.msra.mxu2 %v229_v15  ;;  %v224_v19 = vld [vmem:[#allocation8 + $0xd8] sm:$0xff]  ;;  %v225_v20 = vld [vmem:[#allocation8 + $0xe0] sm:$0xff]  ;;  %v223_v21 = vld [vmem:[#allocation8 + $0xd0] sm:$0xff]  ;;  %258 = vmatpush.msra.mxu0 %v227_v16 }
  0x35   :  { %s104_s20 = sadd.s32 %s103_s28, %s102_s27  ;;  %s117_s0 = sshrl.u32 %s904_s23, 3  ;;  %278 = vmatpush.msra.mxu1 %v228_v17  ;;  %v221_v22 = vld [vmem:[#allocation8 + $0xc0] sm:$0xff]  ;;  %v222_v23 = vld [vmem:[#allocation8 + $0xc8] sm:$0xff]  ;;  %v220_v24 = vld [vmem:[#allocation8 + $0xb8] sm:$0xff] }
  0x36   :  { %s105_s10 = scalar_lea.hbm %s1051_s2, %s104_s20  ;;  %s118_s11 = sand.u32 7, %s904_s23   ;;  %299 = vmatpush.msra.mxu2 %v226_v18  ;;  %259 = vmatpush.msra.mxu0 %v224_v19  ;;  %v218_v25 = vld [vmem:[#allocation8 + $0xa8] sm:$0xff]  ;;  %v219_v26 = vld [vmem:[#allocation8 + $0xb0] sm:$0xff] }
  0x37   :  { %s108_s12 = sshll.u32 %s105_s10, 4  ;;  %s119_s13 = smul.u32 24, %s117_s0  ;;  %279 = vmatpush.msra.mxu1 %v225_v20  ;;  %s109_s12 = int_to_ptr.hbm [resolvable:$true] %s108_s12 }
  0x38   :  { %300 = vmatpush.msra.mxu2 %v223_v21  ;;  %s661_s19 = sshra.s32 %s109_s12, 4  ;;  %s662_s19 = int_to_ptr.hbm [resolvable:$true] %s661_s19 }
  0x39   :  { %s663_s14 = scalar_lea.hbm %s662_s19, 3  ;;  %p666_p11 = scmp.lt.s32.totalorder %s662_s19, %s1051_s2 }
  0x3a   :  { %p664_p10 = scmp.ne.s32.totalorder %s662_s19, %s663_s14  ;;  %p667_p12 = scmp.lt.s32.totalorder %s921_s5, %s663_s14 }
  0x3c   :  { %p668_p13 = por %p667_p12, %p666_p11 }
  0x3e   :  { %p669_p0 = pnand %p668_p13, %p664_p10 }
  0x40   :  { %672 = shalt.err (!%p669_p0)  }
  0x41   :  { %115 = dma.hbm_to_vmem [thread:$0]  %s109_s12, 48, %s111_s22, [#allocation3 + $0x2], %s836_s24, %s836_s24, %s837_s25  ;;  %v217_v27 = vld [vmem:[#allocation8 + $0xa0] sm:$0xff]  ;;  %260 = vmatpush.msra.mxu0 %v221_v22  ;;  %280 = vmatpush.msra.mxu1 %v222_v23  ;;  %v215_v28 = vld [vmem:[#allocation8 + $0x90] sm:$0xff]  ;;  %v216_v29 = vld [vmem:[#allocation8 + $0x98] sm:$0xff] }
  0x42   :  { %s120_s23 = sadd.s32 %s119_s13, %s118_s11  ;;  %s838_s1 = smov [#allocation2 + $0x3]   ;;  %301 = vmatpush.msra.mxu2 %v220_v24  ;;  %v214_v30 = vld [vmem:[#allocation8 + $0x88] sm:$0xff]  ;;  %v212_v31 = vld [vmem:[#allocation8 + $0x78] sm:$0xff]  ;;  %v213_v32 = vld [vmem:[#allocation8 + $0x80] sm:$0xff] }
  0x43   :  { %s958_s16 = sshll.u32 %s838_s1, 4  ;;  %s121_s26 = scalar_lea.hbm %s1051_s2, %s120_s23  ;;  %261 = vmatpush.msra.mxu0 %v218_v25  ;;  %281 = vmatpush.msra.mxu1 %v219_v26  ;;  %v211_v33 = vld [vmem:[#allocation8 + $0x70] sm:$0xff]  ;;  %s127_s16 = int_to_ptr.vmem [resolvable:$true] %s958_s16 }
  0x44   :  { %s124_s22 = sshll.u32 %s121_s26, 4  ;;  %s964_s27 = sld [smem:[#allocation5 + $0x4]]  ;;  %302 = vmatpush.msra.mxu2 %v217_v27  ;;  %s125_s22 = int_to_ptr.hbm [resolvable:$true] %s124_s22 }
  0x45   :  { %262 = vmatpush.msra.mxu0 %v215_v28  ;;  %282 = vmatpush.msra.mxu1 %v216_v29  ;;  %s685_s28 = sshra.s32 %s125_s22, 4  ;;  %s686_s28 = int_to_ptr.hbm [resolvable:$true] %s685_s28 }
  0x46   :  { %s687_s29 = scalar_lea.hbm %s686_s28, 3  ;;  %p690_p2 = scmp.lt.s32.totalorder %s686_s28, %s1051_s2 }
  0x47   :  { %p688_p1 = scmp.ne.s32.totalorder %s686_s28, %s687_s29  ;;  %p691_p3 = scmp.lt.s32.totalorder %s921_s5, %s687_s29 }
  0x49   :  { %p692_p4 = por %p691_p3, %p690_p2 }
  0x4b   :  { %p693_p5 = pnand %p692_p4, %p688_p1 }
  0x4d   :  { %696 = shalt.err (!%p693_p5)  }
  0x4e   :  { %131 = dma.hbm_to_vmem [thread:$0]  %s125_s22, 48, %s127_s16, [#allocation3 + $0x3], %s836_s24, %s836_s24, %s837_s25  ;;  %303 = vmatpush.msra.mxu2 %v214_v30  ;;  %v209_v34 = vld [vmem:[#allocation8 + $0x60] sm:$0xff]  ;;  %v210_v35 = vld [vmem:[#allocation8 + $0x68] sm:$0xff]  ;;  %v208_v36 = vld [vmem:[#allocation8 + $0x58] sm:$0xff]  ;;  %263 = vmatpush.msra.mxu0 %v212_v31 }
  0x4f   :  { %s839_s7 = smov [#allocation2 + $0x4]   ;;  %s975_s0 = sld [smem:[#allocation5 + $0x5]]  ;;  %283 = vmatpush.msra.mxu1 %v213_v32  ;;  %v206_v37 = vld [vmem:[#allocation8 + $0x48] sm:$0xff]  ;;  %v207_v38 = vld [vmem:[#allocation8 + $0x50] sm:$0xff]  ;;  %v205_v39 = vld [vmem:[#allocation8 + $0x40] sm:$0xff] }
  0x50   :  { %s973_s20 = sshll.u32 %s839_s7, 4  ;;  %304 = vmatpush.msra.mxu2 %v211_v33  ;;  %s840_s8 = smov [#allocation2 + $0x5]   ;;  %264 = vmatpush.msra.mxu0 %v209_v34  ;;  %v203_v40 = vld [vmem:[#allocation8 + $0x30] sm:$0xff]  ;;  %v204_v41 = vld [vmem:[#allocation8 + $0x38] sm:$0xff]  ;;  %v202_v42 = vld [vmem:[#allocation8 + $0x28] sm:$0xff]  ;;  %s143_s20 = int_to_ptr.vmem [resolvable:$true] %s973_s20 }
  0x51   :  { %s978_s9 = sshll.u32 %s840_s8, 4  ;;  %s980_s10 = sld [smem:[#allocation5 + $0x6]]  ;;  %284 = vmatpush.msra.mxu1 %v210_v35  ;;  %v200_v43 = vld [vmem:[#allocation8 + $0x18] sm:$0xff]  ;;  %v201_v44 = vld [vmem:[#allocation8 + $0x20] sm:$0xff]  ;;  %v199_v45 = vld [vmem:[#allocation8 + $0x10] sm:$0xff]  ;;  %s159_s9 = int_to_ptr.vmem [resolvable:$true] %s978_s9 }
  0x52   :  { %s133_s11 = sshrl.u32 %s964_s27, 3  ;;  %s134_s12 = sand.u32 7, %s964_s27   ;;  %305 = vmatpush.msra.mxu2 %v208_v36  ;;  %265 = vmatpush.msra.mxu0 %v206_v37  ;;  %v196_v46 = vld [vmem:[#allocation6] sm:$0xff]  ;;  %v197_v47 = vld [vmem:[#allocation8] sm:$0xff]  ;;  %v198_v48 = vld [vmem:[#allocation8 + $0x8] sm:$0xff] }
  0x53   :  { %s135_s13 = smul.u32 24, %s133_s11  ;;  %285 = vmatpush.msra.mxu1 %v207_v38  ;;  %s985_s19 = sld [smem:[#allocation5 + $0x7]] }
  0x54   :  { %306 = vmatpush.msra.mxu2 %v205_v39  ;;  %266 = vmatpush.msra.mxu0 %v203_v40 }
  0x55   :  { %s136_s14 = sadd.s32 %s135_s13, %s134_s12  ;;  %s149_s3 = sshrl.u32 %s975_s0, 3  ;;  %286 = vmatpush.msra.mxu1 %v204_v41 }
  0x56   :  { %s137_s1 = scalar_lea.hbm %s1051_s2, %s136_s14  ;;  %s150_s16 = sand.u32 7, %s975_s0   ;;  %307 = vmatpush.msra.mxu2 %v202_v42  ;;  %267 = vmatpush.msra.mxu0 %v200_v43 }
  0x57   :  { %s140_s18 = sshll.u32 %s137_s1, 4  ;;  %s151_s21 = smul.u32 24, %s149_s3  ;;  %287 = vmatpush.msra.mxu1 %v201_v44  ;;  %s141_s18 = int_to_ptr.hbm [resolvable:$true] %s140_s18 }
  0x58   :  { %s165_s26 = sshrl.u32 %s980_s10, 3  ;;  %308 = vmatpush.msra.mxu2 %v199_v45  ;;  %s709_s22 = sshra.s32 %s141_s18, 4  ;;  %s710_s22 = int_to_ptr.hbm [resolvable:$true] %s709_s22 }
  0x59   :  { %s711_s27 = scalar_lea.hbm %s710_s22, 3  ;;  %p714_p7 = scmp.lt.s32.totalorder %s710_s22, %s1051_s2 }
  0x5a   :  { %p712_p6 = scmp.ne.s32.totalorder %s710_s22, %s711_s27  ;;  %p715_p8 = scmp.lt.s32.totalorder %s921_s5, %s711_s27 }
  0x5c   :  { %p716_p9 = por %p715_p8, %p714_p7 }
  0x5e   :  { %p717_p10 = pnand %p716_p9, %p712_p6 }
  0x60   :  { %720 = shalt.err (!%p717_p10)  }
  0x61   :  { %147 = dma.hbm_to_vmem [thread:$0]  %s141_s18, 48, %s143_s20, [#allocation3 + $0x4], %s836_s24, %s836_s24, %s837_s25  ;;  %309 = vmatmul.f32.vlgmr.msra.gmra.mxu2 %v196_v46  ;;  %268 = vmatpush.msra.mxu0 %v197_v47 }
  0x62   :  { %s152_s30 = sadd.s32 %s151_s21, %s150_s16  ;;  %s166_s17 = sand.u32 7, %s980_s10   ;;  %288 = vmatpush.msra.mxu1 %v198_v48  ;;  %269 = vmatmul.f32.vlgmr.msra.gmra.mxu0 %v196_v46 }
  0x63   :  { %s153_s8 = scalar_lea.hbm %s1051_s2, %s152_s30  ;;  %s167_s11 = smul.u32 24, %s165_s26  ;;  %289 = vmatmul.f32.vlgmr.msra.gmra.mxu1 %v196_v46 }
  0x64   :  { %s156_s12 = sshll.u32 %s153_s8, 4  ;;  %s841_s13 = smov [#allocation2 + $0x6]   ;;  %s157_s12 = int_to_ptr.hbm [resolvable:$true] %s156_s12 }
  0x65   :  { %s1006_s14 = sshll.u32 %s841_s13, 4  ;;  %s168_s3 = sadd.s32 %s167_s11, %s166_s17  ;;  %s175_s14 = int_to_ptr.vmem [resolvable:$true] %s1006_s14 }
  0x66   :  { %s733_s20 = sshra.s32 %s157_s12, 4  ;;  %s734_s20 = int_to_ptr.hbm [resolvable:$true] %s733_s20 }
  0x67   :  { %s735_s15 = scalar_lea.hbm %s734_s20, 3  ;;  %p738_p12 = scmp.lt.s32.totalorder %s734_s20, %s1051_s2 }
  0x68   :  { %p736_p11 = scmp.ne.s32.totalorder %s734_s20, %s735_s15  ;;  %p739_p13 = scmp.lt.s32.totalorder %s921_s5, %s735_s15 }
  0x6a   :  { %p740_p0 = por %p739_p13, %p738_p12 }
  0x6c   :  { %p741_p1 = pnand %p740_p0, %p736_p11 }
  0x6e   :  { %744 = shalt.err (!%p741_p1)  }
  0x6f   :  { %163 = dma.hbm_to_vmem [thread:$0]  %s157_s12, 48, %s159_s9, [#allocation3 + $0x5], %s836_s24, %s836_s24, %s837_s25 }
  0x70   :  { %s169_s18 = scalar_lea.hbm %s1051_s2, %s168_s3  ;;  %s181_s26 = sshrl.u32 %s985_s19, 3 }
  0x71   :  { %s172_s21 = sshll.u32 %s169_s18, 4  ;;  %s182_s22 = sand.u32 7, %s985_s19   ;;  %s173_s21 = int_to_ptr.hbm [resolvable:$true] %s172_s21 }
  0x72   :  { %s757_s27 = sshra.s32 %s173_s21, 4  ;;  %s758_s27 = int_to_ptr.hbm [resolvable:$true] %s757_s27 }
  0x73   :  { %s759_s28 = scalar_lea.hbm %s758_s27, 3  ;;  %p762_p3 = scmp.lt.s32.totalorder %s758_s27, %s1051_s2 }
  0x74   :  { %p760_p2 = scmp.ne.s32.totalorder %s758_s27, %s759_s28  ;;  %p763_p4 = scmp.lt.s32.totalorder %s921_s5, %s759_s28 }
  0x76   :  { %p764_p5 = por %p763_p4, %p762_p3 }
  0x78   :  { %p765_p6 = pnand %p764_p5, %p760_p2 }
  0x7a   :  { %768 = shalt.err (!%p765_p6)  }
  0x7b   :  { %179 = dma.hbm_to_vmem [thread:$0]  %s173_s21, 48, %s175_s14, [#allocation3 + $0x6], %s836_s24, %s836_s24, %s837_s25 }
  0x7c   :  { %s183_s9 = smul.u32 24, %s181_s26  ;;  %s842_s17 = smov [#allocation2 + $0x7]  }
  0x7d   :  { %s190_s19 = sshll.u32 %s842_s17, 4  ;;  %s191_s19 = int_to_ptr.vmem [resolvable:$true] %s190_s19 }
  0x7e   :  { %s184_s7 = sadd.s32 %s183_s9, %s182_s22 }
  0x7f   :  { %s185_s11 = scalar_lea.hbm %s1051_s2, %s184_s7 }
  0x80   :  { %s188_s12 = sshll.u32 %s185_s11, 4  ;;  %s189_s12 = int_to_ptr.hbm [resolvable:$true] %s188_s12 }
  0x81   :  { %s781_s13 = sshra.s32 %s189_s12, 4  ;;  %s782_s13 = int_to_ptr.hbm [resolvable:$true] %s781_s13 }
  0x82   :  { %s783_s3 = scalar_lea.hbm %s782_s13, 3  ;;  %p786_p8 = scmp.lt.s32.totalorder %s782_s13, %s1051_s2 }
  0x83   :  { %p784_p7 = scmp.ne.s32.totalorder %s782_s13, %s783_s3  ;;  %p787_p9 = scmp.lt.s32.totalorder %s921_s5, %s783_s3 }
  0x85   :  { %p788_p10 = por %p787_p9, %p786_p8 }
  0x87   :  { %p789_p11 = pnand %p788_p10, %p784_p7 }
  0x89   :  { %792 = shalt.err (!%p789_p11)  }
  0x8a   :  { %195 = dma.hbm_to_vmem [thread:$0]  %s189_s12, 48, %s191_s19, [#allocation3 + $0x7], %s836_s24, %s836_s24, %s837_s25  ;;  %v245_v49 = vld [vmem:[#allocation10] sm:$0x7] }
  0x8b   :  { %v247_v50 = vperm.slane %v245_v49, 0  ;;  %v248_v51 = vperm.slane %v245_v49, 1  ;;  %v249_v56 = vperm.slane %v245_v49, 2 }
  0xdf   :  { %v270_v52 = vpop.f32.mrf.mxu0 }
  0xe0   :  { %v271_v53 = vadd.f32 %v270_v52, %v247_v50  ;;  %v290_v54 = vpop.f32.mrf.mxu1 }
  0xe1   :  { %v291_v55 = vadd.f32 %v290_v54, %v248_v51 }
  0xe4   :  { %v310_v57 = vpop.f32.mrf.mxu2 }
  0xe5   :  { %v1040_v58 = vadd.f32 %v310_v57, %v249_v56 }
  0xe6   :  { %811 = dma.done.wait [#allocation3], 48 }
  0xe7   :  { %812 = vsyncadd [#allocation3], 4294967248 }
  0xe8   :  { %813 = dma.done.wait [#allocation3 + $0x1], 48 }
  0xe9   :  { %814 = vsyncadd [#allocation3 + $0x1], 4294967248 }
  0xea   :  { %815 = dma.done.wait [#allocation3 + $0x2], 48 }
  0xeb   :  { %816 = vsyncadd [#allocation3 + $0x2], 4294967248 }
  0xec   :  { %817 = dma.done.wait [#allocation3 + $0x3], 48 }
  0xed   :  { %818 = vsyncadd [#allocation3 + $0x3], 4294967248 }
  0xee   :  { %819 = dma.done.wait [#allocation3 + $0x4], 48 }
  0xef   :  { %820 = vsyncadd [#allocation3 + $0x4], 4294967248 }
  0xf0   :  { %821 = dma.done.wait [#allocation3 + $0x5], 48 }
  0xf1   :  { %822 = vsyncadd [#allocation3 + $0x5], 4294967248 }
  0xf2   :  { %823 = dma.done.wait [#allocation3 + $0x6], 48 }
  0xf3   :  { %824 = vsyncadd [#allocation3 + $0x6], 4294967248 }
  0xf4   :  { %825 = dma.done.wait [#allocation3 + $0x7], 48 }
  0xf5   :  { %826 = vsyncadd [#allocation3 + $0x7], 4294967248  ;;  %v338_v59 = vld [vmem:[#allocation2] sm:$0xff]  ;;  %v339_v60 = vld [vmem:[#allocation2 + $0x8] sm:$0xff] }
  0xf6   :  { %v341_v61 = vld [vmem:[%s1053_s4] sm:$0x7]  ;;  %v340_v20 = vld [vmem:[#allocation2 + $0x10] sm:$0xff]  ;;  %v352_v35 = vld [vmem:[#allocation6] sm:$0xff] }
  0xf7   :  { %v343_v62 = vperm.slane %v341_v61, 0  ;;  %v344_v63 = vperm.slane %v341_v61, 1  ;;  %v345_v18 = vperm.slane %v341_v61, 2 }
  0xf9   :  { %v349_v0 = vadd.f32 %v343_v62, %v338_v59  ;;  %v350_v1 = vadd.f32 %v344_v63, %v339_v60  ;;  %v351_v27 = vadd.f32 %v345_v18, %v340_v20 }
  0xfb   :  { %v353_v2 = vadd.f32 %v349_v0, %v271_v53  ;;  %v373_v3 = vadd.f32 %v350_v1, %v291_v55 }
  0xfd   :  { %v493_v4 = vmul.f32 -1.442695, %v353_v2  ;;  %v494_v5 = vmul.f32 -1.442695, %v373_v3 }
  0xff   :  { %519 = vpow2.f32 %v493_v4 }
 0x100   :  { %521 = vpow2.f32 %v494_v5 }
 0x105   :  { %v520_v6 = vpop.eup %519 }
 0x106   :  { %v522_v7 = vpop.eup %521  ;;  %v357_v8 = vadd.f32 1.0, %v520_v6 }
 0x107   :  { %v377_v9 = vadd.f32 1.0, %v522_v7 }
 0x108   :  { %523 = vrcp.f32 %v357_v8  ;;  %v369_v13 = vand.u32 2147483648, %v357_v8  ;;  %vm363_vm0 = vweird.f32 %v357_v8  ;;  %v367_v16 = vand.u32 2147483647, %v357_v8 }
 0x109   :  { %525 = vrcp.f32 %v377_v9  ;;  %vm383_vm3 = vweird.f32 %v377_v9  ;;  %v389_v24 = vand.u32 2147483648, %v377_v9  ;;  %v387_v26 = vand.u32 2147483647, %v377_v9 }
 0x10a   :  { %v370_v21 = vor.u32 1.1754944e-38, %v369_v13  ;;  %vm368_vm5 = vcmp.eq.f32.partialorder %v367_v16, 8.507059e+37 }
 0x10b   :  { %v390_v30 = vor.u32 1.1754944e-38, %v389_v24  ;;  %vm388_vm7 = vcmp.eq.f32.partialorder %v387_v26, 8.507059e+37 }
 0x10e   :  { %v524_v10 = vpop.eup %523 }
 0x10f   :  { %v526_v11 = vpop.eup %525  ;;  %v359_v12 = vmul.f32 %v524_v10, %v357_v8  ;;  %vm364_vm1 = vweird.f32 %v524_v10 }
 0x110   :  { %v379_v14 = vmul.f32 %v526_v11, %v377_v9  ;;  %vm365_vm2 = vmor %vm363_vm0, %vm364_vm1  ;;  %vm384_vm4 = vweird.f32 %v526_v11 }
 0x111   :  { %v360_v15 = vsub.f32 1.0, %v359_v12  ;;  %vm385_vm6 = vmor %vm383_vm3, %vm384_vm4 }
 0x112   :  { %v380_v17 = vsub.f32 1.0, %v379_v14 }
 0x113   :  { %v361_v19 = vmul.f32 %v524_v10, %v360_v15 }
 0x114   :  { %v381_v22 = vmul.f32 %v526_v11, %v380_v17 }
 0x115   :  { %v362_v23 = vadd.f32 %v524_v10, %v361_v19 }
 0x116   :  { %v382_v25 = vadd.f32 %v526_v11, %v381_v22 }
 0x117   :  { %v366_v28 = vsel %vm365_vm2, %v524_v10, %v362_v23 }
 0x118   :  { %v371_v29 = vsel %vm368_vm5, %v370_v21, %v366_v28  ;;  %v386_v32 = vsel %vm385_vm6, %v526_v11, %v382_v25 }
 0x119   :  { %v393_v31 = vmul.f32 %v371_v29, %v1040_v58  ;;  %v391_v34 = vsel %vm388_vm7, %v390_v30, %v386_v32 }
 0x11a   :  { %v396_v36 = vsub.f32 1.0, %v391_v34  ;;  %v398_v37 = vmul.f32 %v391_v34, %v352_v35 }
 0x11b   :  { %v394_v33 = vadd.f32 %v393_v31, %v351_v27 }
 0x11d   :  { %527 = vtanh.f32 %v394_v33 }
 0x123   :  { %v528_v38 = vpop.eup %527 }
 0x124   :  { %v397_v39 = vmul.f32 %v528_v38, %v396_v36 }
 0x126   :  { %v399_v40 = vadd.f32 %v398_v37, %v397_v39 }
 0x128   :  { %400 = vst [vmem:[%s1055_s6] sm:$0xff] %v399_v40 }
 0x129   :  { %405 = vsyncpa [#allocation7], 1 }
 0x12a   :  { %406 = vsyncpa [#allocation9], 1 }
 0x12b   :  { %407 = vsyncmov [#allocation3] }
 0x12e   :  { %s408_s25 = vpop.sfrf %407 }
 0x12f   :  { %p495_p12 = scmp.ne.s32.totalorder %s408_s25, 0 }
 0x131   :  { %412 = shalt.err (%p495_p12)  }
 0x132   :  { %414 = vsyncmov [#allocation3 + $0x1] }
 0x135   :  { %s415_s14 = vpop.sfrf %414 }
 0x136   :  { %p496_p13 = scmp.ne.s32.totalorder %s415_s14, 0 }
 0x138   :  { %419 = shalt.err (%p496_p13)  }
 0x139   :  { %421 = vsyncmov [#allocation3 + $0x2] }
 0x13c   :  { %s422_s10 = vpop.sfrf %421 }
 0x13d   :  { %p497_p0 = scmp.ne.s32.totalorder %s422_s10, 0 }
 0x13f   :  { %426 = shalt.err (%p497_p0)  }
 0x140   :  { %428 = vsyncmov [#allocation3 + $0x3] }
 0x143   :  { %s429_s23 = vpop.sfrf %428 }
 0x144   :  { %p498_p1 = scmp.ne.s32.totalorder %s429_s23, 0 }
 0x146   :  { %433 = shalt.err (%p498_p1)  }
 0x147   :  { %435 = vsyncmov [#allocation3 + $0x4] }
 0x14a   :  { %s436_s6 = vpop.sfrf %435 }
 0x14b   :  { %p499_p2 = scmp.ne.s32.totalorder %s436_s6, 0 }
 0x14d   :  { %440 = shalt.err (%p499_p2)  }
 0x14e   :  { %442 = vsyncmov [#allocation3 + $0x5] }
 0x151   :  { %s443_s1 = vpop.sfrf %442 }
 0x152   :  { %p500_p3 = scmp.ne.s32.totalorder %s443_s1, 0 }
 0x154   :  { %447 = shalt.err (%p500_p3)  }
 0x155   :  { %449 = vsyncmov [#allocation3 + $0x6] }
 0x158   :  { %s450_s16 = vpop.sfrf %449 }
 0x159   :  { %p501_p4 = scmp.ne.s32.totalorder %s450_s16, 0 }
 0x15b   :  { %454 = shalt.err (%p501_p4)  }
 0x15c   :  { %456 = vsyncmov [#allocation3 + $0x7] }
 0x15f   :  { %s457_s18 = vpop.sfrf %456 }
 0x160   :  { %p502_p5 = scmp.ne.s32.totalorder %s457_s18, 0 }
 0x162   :  { %461 = shalt.err (%p502_p5)  }

</bundles_post_ra>
